<compile_context>
chip_gen: v5e
topology: v5e:2x2
jax: 0.10.0
libtpu: 0.0.40
codegen_flags: <defaults>
</compile_context>

<pallas_src>
import functools
import math

import jax
import jax.numpy as jnp
from jax.experimental import pallas as pl
from jax.experimental.pallas import tpu as pltpu

EPS = 1e-5
_VMEM_LIMIT = 32 * 1024 * 1024


# ----------------------------------------------------------------------------
# Small helpers
# ----------------------------------------------------------------------------
def _round_up(x, m):
    return ((x + m - 1) // m) * m


def _round_c(c):
    # channel padding rule: lane-dense multiples of 128 (image input stays 3)
    return c if c == 3 else _round_up(c, 128)


def _pad_to(x, mult, axis):
    pad = (-x.shape[axis]) % mult
    if pad == 0:
        return x
    widths = [(0, 0)] * x.ndim
    widths[axis] = (0, pad)
    return jnp.pad(x, widths)


def _compiler_params(dims):
    return pltpu.CompilerParams(dimension_semantics=dims,
                                vmem_limit_bytes=_VMEM_LIMIT)


# ----------------------------------------------------------------------------
# Matmul (conv core) kernel: bf16 MXU, f32 accumulate, fused BN/residual/ReLU
# ----------------------------------------------------------------------------
def _make_mm_kernel(apply_relu, has_residual, multi_k):
    def kernel(*refs):
        if multi_k:
            if has_residual:
                a_ref, b_ref, s_ref, c_ref, r_ref, o_ref, acc_ref = refs
            else:
                a_ref, b_ref, s_ref, c_ref, o_ref, acc_ref = refs
        else:
            if has_residual:
                a_ref, b_ref, s_ref, c_ref, r_ref, o_ref = refs
            else:
                a_ref, b_ref, s_ref, c_ref, o_ref = refs

        def finish(acc):
            out = acc * s_ref[...] + c_ref[...]
            if has_residual:
                out = out + r_ref[...].astype(jnp.float32)
            if apply_relu:
                out = jnp.maximum(out, 0.0)
            o_ref[...] = out.astype(o_ref.dtype)

        if multi_k:
            k = pl.program_id(2)

            @pl.when(k == 0)
            def _():
                acc_ref[...] = jnp.zeros_like(acc_ref)

            acc_ref[...] += jnp.dot(a_ref[...], b_ref[...],
                                    preferred_element_type=jnp.float32)

            @pl.when(k == pl.num_programs(2) - 1)
            def _():
                finish(acc_ref[...])
        else:
            finish(jnp.dot(a_ref[...], b_ref[...],
                           preferred_element_type=jnp.float32))

    return kernel


def _pick_tm(m):
    if m <= 256:
        return _round_up(m, 8)
    for t in range(256, 7, -8):          # prefer the largest tile dividing M
        if m % t == 0:
            return t
    return 128                            # fall back to padding M


def _pick_tk(k):
    if k <= 2048:
        return k, False                   # single full-K block, no k grid axis
    for cand in (2048, 1536, 1152, 1024, 768, 512, 384, 256, 128):
        if k % cand == 0:
            return cand, True
    return 512, True                      # requires K padding (not hit here)


def matmul_scale_bias(a, b, scale, bias, *, relu, residual=None,
                      out_dtype=jnp.bfloat16):
    """out = act((a @ b) * scale + bias (+ residual)).

    a:(M,K), b:(K,N) with N % 128 == 0 (weights are pre-padded), scale/bias
    (1,N) f32.  MXU runs bf16 x bf16 -> f32; epilogue fused on the last K step.
    """
    M, K = a.shape
    Kb, N = b.shape
    assert K == Kb and N % 128 == 0, (a.shape, b.shape)
    a = a.astype(jnp.bfloat16)
    b = b.astype(jnp.bfloat16)
    scale = scale.reshape(1, N).astype(jnp.float32)
    bias = bias.reshape(1, N).astype(jnp.float32)

    if K % 128:                           # only the 7x7 stem (K = 147) hits this
        a = _pad_to(a, 128, 1)
        b = _pad_to(b, 128, 0)
        K = a.shape[1]

    tm = _pick_tm(M)
    tn = 256 if N % 256 == 0 else 128
    tk, multi_k = _pick_tk(K)

    a = _pad_to(a, tm, 0)
    Mp = a.shape[0]
    if multi_k and K % tk:
        a = _pad_to(a, tk, 1)
        b = _pad_to(b, tk, 0)
    Kp = a.shape[1]

    has_res = residual is not None
    inputs = [a, b, scale, bias]
    if has_res:
        inputs.append(_pad_to(residual.astype(jnp.bfloat16), tm, 0))

    if multi_k:
        grid = (N // tn, Mp // tm, Kp // tk)
        in_specs = [
            pl.BlockSpec((tm, tk), lambda j, i, k: (i, k)),
            pl.BlockSpec((tk, tn), lambda j, i, k: (k, j)),
            pl.BlockSpec((1, tn), lambda j, i, k: (0, j)),
            pl.BlockSpec((1, tn), lambda j, i, k: (0, j)),
        ]
        if has_res:
            in_specs.append(pl.BlockSpec((tm, tn), lambda j, i, k: (i, j)))
        out_spec = pl.BlockSpec((tm, tn), lambda j, i, k: (i, j))
        scratch = [pltpu.VMEM((tm, tn), jnp.float32)]
        dims = ("parallel", "parallel", "arbitrary")
    else:
        # grid = (N tiles, M tiles): M innermost, B/scale/bias block indices do
        # not depend on it -> the weight tile stays VMEM-resident, only A streams.
        grid = (N // tn, Mp // tm)
        in_specs = [
            pl.BlockSpec((tm, Kp), lambda j, i: (i, 0)),
            pl.BlockSpec((Kp, tn), lambda j, i: (0, j)),
            pl.BlockSpec((1, tn), lambda j, i: (0, j)),
            pl.BlockSpec((1, tn), lambda j, i: (0, j)),
        ]
        if has_res:
            in_specs.append(pl.BlockSpec((tm, tn), lambda j, i: (i, j)))
        out_spec = pl.BlockSpec((tm, tn), lambda j, i: (i, j))
        scratch = []
        dims = ("parallel", "parallel")

    out = pl.pallas_call(
        _make_mm_kernel(relu, has_res, multi_k),
        out_shape=jax.ShapeDtypeStruct((Mp, N), out_dtype),
        grid_spec=pltpu.PrefetchScalarGridSpec(
            num_scalar_prefetch=0,
            grid=grid,
            in_specs=in_specs,
            out_specs=out_spec,
            scratch_shapes=scratch),
        compiler_params=_compiler_params(dims),
    )(*inputs)
    return out if Mp == M else out[:M]


# ----------------------------------------------------------------------------
# IBN layer (per-sample InstanceNorm on first half of channels + folded BN on
# the second half) fused with ReLU.
# ----------------------------------------------------------------------------
def _ibn_split_kernel(x_ref, gin_ref, bin_ref, sbn_ref, cbn_ref, o_ref, *, half):
    # lane-aligned halves: compute each branch only on its own channels
    xin = x_ref[0, :, :half].astype(jnp.float32)
    mean = jnp.mean(xin, axis=0, keepdims=True)
    var = jnp.mean(jnp.square(xin - mean), axis=0, keepdims=True)
    inv = jax.lax.rsqrt(var + EPS)
    yin = (xin - mean) * inv * gin_ref[:, :half] + bin_ref[:, :half]
    o_ref[0, :, :half] = jnp.maximum(yin, 0.0).astype(o_ref.dtype)

    xbn = x_ref[0, :, half:].astype(jnp.float32)
    ybn = xbn * sbn_ref[:, half:] + cbn_ref[:, half:]
    o_ref[0, :, half:] = jnp.maximum(ybn, 0.0).astype(o_ref.dtype)


def _ibn_where_kernel(x_ref, gin_ref, bin_ref, sbn_ref, cbn_ref, o_ref, *, half):
    x = x_ref[0].astype(jnp.float32)                    # (HW, C)
    mean = jnp.mean(x, axis=0, keepdims=True)
    var = jnp.mean(jnp.square(x - mean), axis=0, keepdims=True)
    inv = jax.lax.rsqrt(var + EPS)
    in_out = (x - mean) * inv * gin_ref[...] + bin_ref[...]
    bn_out = x * sbn_ref[...] + cbn_ref[...]
    ch = jax.lax.broadcasted_iota(jnp.int32, x.shape, 1)
    out = jnp.where(ch < half, in_out, bn_out)
    o_ref[0] = jnp.maximum(out, 0.0).astype(o_ref.dtype)


def ibn_relu(x, gamma_in, beta_in, bn_scale, bn_bias, half):
    """x: (N, HW, C) bf16. IN on first `half` channels, folded BN on rest, ReLU."""
    N, HW, C = x.shape
    if half % 128 == 0 and (C - half) % 128 == 0:
        kern = functools.partial(_ibn_split_kernel, half=half)
    else:
        kern = functools.partial(_ibn_where_kernel, half=half)
    return pl.pallas_call(
        kern,
        out_shape=jax.ShapeDtypeStruct((N, HW, C), x.dtype),
        grid_spec=pltpu.PrefetchScalarGridSpec(
            num_scalar_prefetch=0,
            grid=(N,),
            in_specs=[pl.BlockSpec((1, HW, C), lambda n: (n, 0, 0))]
                     + [pl.BlockSpec((1, C), lambda n: (0, 0))] * 4,
            out_specs=pl.BlockSpec((1, HW, C), lambda n: (n, 0, 0))),
        compiler_params=_compiler_params(("parallel",)),
    )(x, gamma_in, beta_in, bn_scale, bn_bias)


# ----------------------------------------------------------------------------
# MaxPool 3x3 / stride 2 / pad 1.  Only the 3 kw taps are pre-sliced in XLA;
# the 3 kh taps and the 9-way max run inside the kernel (no (9, M, C) stack).
# ----------------------------------------------------------------------------
def _maxpool9_kernel(x0_ref, x1_ref, x2_ref, o_ref, *, ho):
    m = None
    for r in (x0_ref, x1_ref, x2_ref):                           # kw taps
        for t in (r[0, 0:ho, 0], r[0, 0:ho, 1], r[0, 1:ho + 1, 0]):  # kh taps
            m = t if m is None else jnp.maximum(m, t)
    o_ref[0] = m


def maxpool_3x3_s2(x):
    """x: (N,H,W,C) NHWC (post-ReLU, >= 0 so zero padding == -inf padding)."""
    N, H, W, C = x.shape
    Ho = (H + 2 - 3) // 2 + 1
    Wo = (W + 2 - 3) // 2 + 1
    xp = jnp.pad(x, ((0, 0), (1, 1), (1, 1), (0, 0)))
    Hp = H + 2
    if Hp % 2:
        xp = jnp.pad(xp, ((0, 0), (0, 1), (0, 0), (0, 0)))
        Hp += 1
    Hq = Hp // 2
    assert Hq >= Ho + 1
    taps = []
    for dw in range(3):
        xw = jax.lax.slice(xp, (0, 0, dw, 0), (N, Hp, dw + 2 * Wo - 1, C),
                           (1, 1, 2, 1))                 # (N, Hp, Wo, C)
        taps.append(xw.reshape(N, Hq, 2, Wo, C))         # even/odd row split
    return pl.pallas_call(
        functools.partial(_maxpool9_kernel, ho=Ho),
        out_shape=jax.ShapeDtypeStruct((N, Ho, Wo, C), x.dtype),
        grid_spec=pltpu.PrefetchScalarGridSpec(
            num_scalar_prefetch=0,
            grid=(N,),
            in_specs=[pl.BlockSpec((1, Hq, 2, Wo, C),
                                   lambda n: (n, 0, 0, 0, 0))] * 3,
            out_specs=pl.BlockSpec((1, Ho, Wo, C), lambda n: (n, 0, 0, 0))),
        compiler_params=_compiler_params(("parallel",)),
    )(*taps)


# ----------------------------------------------------------------------------
# Global average pool (AvgPool2d(7) on a 7x7 map)
# ----------------------------------------------------------------------------
def _avgpool_kernel(x_ref, o_ref):
    o_ref[...] = jnp.mean(x_ref[0].astype(jnp.float32), axis=0, keepdims=True)


def avgpool_all(x):
    """x: (N, HW, C) bf16 -> (N, C) f32 global spatial mean."""
    N, HW, C = x.shape
    return pl.pallas_call(
        _avgpool_kernel,
        out_shape=jax.ShapeDtypeStruct((N, C), jnp.float32),
        grid_spec=pltpu.PrefetchScalarGridSpec(
            num_scalar_prefetch=0,
            grid=(N,),
            in_specs=[pl.BlockSpec((1, HW, C), lambda n: (n, 0, 0))],
            out_specs=pl.BlockSpec((1, C), lambda n: (n, 0))),
        compiler_params=_compiler_params(("parallel",)),
    )(x)


# ----------------------------------------------------------------------------
# Glue: im2col + conv wrapper
# ----------------------------------------------------------------------------
def extract_patches(x, kh, kw, stride, padding):
    # TODO(synk): fuse this im2col gather into the matmul kernel (shifted-view
    # K axis / manual DMA) to avoid materializing the kh*kw-expanded patch
    # matrix in HBM; kept in XLA (bf16, so half the previous bytes) for now.
    N, H, W, C = x.shape
    xp = jnp.pad(x, ((0, 0), (padding, padding), (padding, padding), (0, 0)))
    Ho = (H + 2 * padding - kh) // stride + 1
    Wo = (W + 2 * padding - kw) // stride + 1
    cols = [xp[:, dh:dh + stride * (Ho - 1) + 1:stride,
               dw:dw + stride * (Wo - 1) + 1:stride, :]
            for dh in range(kh) for dw in range(kw)]
    patches = jnp.stack(cols, axis=3)                    # (N,Ho,Wo,kh*kw,C)
    return patches.reshape(N * Ho * Wo, kh * kw * C), Ho, Wo


def conv_bn(x, cp, *, stride=1, padding=0, relu=False, residual=None):
    """x: (N,H,W,Cin) bf16, cp: pre-packed {w:(K,Cout) bf16, scale, bias}."""
    N = x.shape[0]
    kh, kw = cp["kh"], cp["kw"]
    cin = x.shape[-1]
    if kh == 1 and kw == 1 and padding == 0:
        xs = x if stride == 1 else x[:, ::stride, ::stride, :]
        Ho, Wo = xs.shape[1], xs.shape[2]
        a = xs.reshape(N * Ho * Wo, cin)
    else:
        a, Ho, Wo = extract_patches(x, kh, kw, stride, padding)
    assert cp["w"].shape[0] == kh * kw * cin, (cp["w"].shape, kh, kw, cin)
    cout = cp["w"].shape[1]
    res = None if residual is None else residual.reshape(N * Ho * Wo, cout)
    out = matmul_scale_bias(a, cp["w"], cp["scale"], cp["bias"],
                            relu=relu, residual=res)
    return out.reshape(N, Ho, Wo, cout)


# ----------------------------------------------------------------------------
# Parameter construction (deterministic, matching the module's __init__).
# Weights are pre-reshaped to (K, Cout_p), pre-cast to bf16, channels padded
# to lane-dense multiples of 128 (zero weights / zero scale+bias on padding).
# ----------------------------------------------------------------------------
def _bn_folded(c):
    gamma = jnp.ones((c,), jnp.float32)
    beta = jnp.zeros((c,), jnp.float32)
    running_mean = jnp.zeros((c,), jnp.float32)
    running_var = jnp.ones((c,), jnp.float32)
    scale = gamma / jnp.sqrt(running_var + EPS)
    bias = beta - running_mean * scale
    return scale, bias


def _conv_params(key, kh, kw, cin, cout, scale_vec, bias_vec):
    cin_p, cout_p = _round_c(cin), _round_c(cout)
    std = math.sqrt(2.0 / (kh * kw * cout))
    w = jax.random.normal(key, (kh, kw, cin, cout), jnp.float32) * std
    w = jnp.pad(w, ((0, 0), (0, 0), (0, cin_p - cin), (0, cout_p - cout)))
    scale = jnp.pad(scale_vec.astype(jnp.float32), (0, cout_p - cout))
    bias = jnp.pad(bias_vec.astype(jnp.float32), (0, cout_p - cout))
    return {"w": w.reshape(kh * kw * cin_p, cout_p).astype(jnp.bfloat16),
            "kh": kh, "kw": kw,
            "scale": scale.reshape(1, cout_p),
            "bias": bias.reshape(1, cout_p)}


def make_bottleneck_params(key, inplanes, planes, ibn, stride, downsample):
    k = jax.random.split(key, 4)
    p = {"ibn": ibn, "stride": stride}
    planes_p = _round_c(planes)
    if ibn:
        half = planes // 2
        p["half"] = half
        # conv1 epilogue is identity; the IBN kernel applies IN/BN + ReLU.
        p["conv1"] = _conv_params(k[0], 1, 1, inplanes, planes,
                                  jnp.ones((planes,), jnp.float32),
                                  jnp.zeros((planes,), jnp.float32))
        p["in_gamma"] = jnp.ones((1, planes_p), jnp.float32)
        p["in_beta"] = jnp.zeros((1, planes_p), jnp.float32)
        bs, bb = _bn_folded(planes - half)
        zf = jnp.zeros((half,), jnp.float32)
        zp = jnp.zeros((planes_p - planes,), jnp.float32)
        p["bn1_scale"] = jnp.concatenate([zf, bs, zp]).reshape(1, planes_p)
        p["bn1_bias"] = jnp.concatenate([zf, bb, zp]).reshape(1, planes_p)
    else:
        bs, bb = _bn_folded(planes)
        p["conv1"] = _conv_params(k[0], 1, 1, inplanes, planes, bs, bb)
    bs2, bb2 = _bn_folded(planes)
    p["conv2"] = _conv_params(k[1], 3, 3, planes, planes, bs2, bb2)
    bs3, bb3 = _bn_folded(planes * 4)
    p["conv3"] = _conv_params(k[2], 1, 1, planes, planes * 4, bs3, bb3)
    if downsample:
        dss, dsb = _bn_folded(planes * 4)
        p["ds"] = _conv_params(k[3], 1, 1, inplanes, planes * 4, dss, dsb)
    return p


def make_resnet_params(key, layers, num_classes=1000):
    scale = 64
    expansion = 4
    keys = iter(jax.random.split(key, 64))
    params = {"num_classes": num_classes}
    s0, b0 = _bn_folded(scale)
    params["conv1"] = _conv_params(next(keys), 7, 7, 3, scale, s0, b0)
    inplanes = scale
    for li, (mul, nblocks, stride) in enumerate(
            zip([1, 2, 4, 8], layers, [1, 2, 2, 2]), start=1):
        planes = scale * mul
        ibn = planes != 512                       # ibn=True unless planes == 512
        blocks = []
        for bi in range(nblocks):
            s = stride if bi == 0 else 1
            ds = (bi == 0) and (s != 1 or inplanes != planes * expansion)
            blocks.append(make_bottleneck_params(next(keys), inplanes, planes,
                                                 ibn, s, ds))
            inplanes = planes * expansion
        params["layer%d" % li] = blocks
    fan_in = scale * 8 * expansion                # 2048
    ncp = _round_up(num_classes, 128)
    bound = 1.0 / math.sqrt(fan_in)
    fc_w = jax.random.uniform(next(keys), (fan_in, num_classes), jnp.float32,
                              -bound, bound)
    fc_b = jax.random.uniform(next(keys), (num_classes,), jnp.float32,
                              -bound, bound)
    params["fc_w"] = jnp.pad(fc_w, ((0, 0), (0, ncp - num_classes))
                             ).astype(jnp.bfloat16)
    params["fc_scale"] = jnp.pad(jnp.ones((num_classes,), jnp.float32),
                                 (0, ncp - num_classes)).reshape(1, ncp)
    params["fc_bias"] = jnp.pad(fc_b, (0, ncp - num_classes)).reshape(1, ncp)
    return params


# ----------------------------------------------------------------------------
# Forward pass
# ----------------------------------------------------------------------------
def bottleneck_forward(p, x):
    if p["ibn"]:
        out = conv_bn(x, p["conv1"], relu=False)
        n, h, w, c = out.shape
        out = ibn_relu(out.reshape(n, h * w, c), p["in_gamma"], p["in_beta"],
                       p["bn1_scale"], p["bn1_bias"], p["half"]
                       ).reshape(n, h, w, c)
    else:
        out = conv_bn(x, p["conv1"], relu=True)
    out = conv_bn(out, p["conv2"], stride=p["stride"], padding=1, relu=True)
    if "ds" in p:
        residual = conv_bn(x, p["ds"], stride=p["stride"], relu=False)
    else:
        residual = x
    out = conv_bn(out, p["conv3"], relu=True, residual=residual)
    return out


def resnet_forward(params, x_nchw):
    x = jnp.transpose(x_nchw, (0, 2, 3, 1)).astype(jnp.bfloat16)  # NCHW -> NHWC
    x = conv_bn(x, params["conv1"], stride=2, padding=3, relu=True)
    x = maxpool_3x3_s2(x)
    for li in range(1, 5):
        for bp in params["layer%d" % li]:
            x = bottleneck_forward(bp, x)
    n, h, w, c = x.shape                                # expect (N, 7, 7, 2048)
    pooled = avgpool_all(x.reshape(n, h * w, c))        # AvgPool2d(7) + flatten
    logits = matmul_scale_bias(pooled, params["fc_w"], params["fc_scale"],
                               params["fc_bias"], relu=False,
                               out_dtype=jnp.float32)
    return logits[:, :params["num_classes"]]


if __name__ == "__main__":
    key = jax.random.PRNGKey(0)
    pkey, xkey = jax.random.split(key)
    # layers=[1,1,1,1] keeps the network small while exercising every stage
    # (IBN blocks in layers 1-3, plain BN bottleneck in layer 4).
    params = make_resnet_params(pkey, layers=[1, 1, 1, 1], num_classes=1000)
    # Input must be 3x224x224 so that AvgPool2d(7) sees a 7x7 feature map.
    x = jax.random.normal(xkey, (2, 3, 224, 224), jnp.float32)
    out = resnet_forward(params, x)
    out = jax.block_until_ready(out)
    assert out.shape == (2, 1000), out.shape
    assert bool(jnp.all(jnp.isfinite(out)))
    print("KERNEL_OK")
</pallas_src>

<mosaic_0001>
module attributes {stable_mosaic.version = 11 : i64} {
  func.func @kernel(%arg0: i32, %arg1: i32, %arg2: memref<256x256xbf16, #tpu.memory_space<vmem>>, %arg3: memref<256x128xbf16, #tpu.memory_space<vmem>>, %arg4: memref<1x128xf32, #tpu.memory_space<vmem>>, %arg5: memref<1x128xf32, #tpu.memory_space<vmem>>, %arg6: memref<256x128xbf16, #tpu.memory_space<vmem>>) attributes {dimension_semantics = [#tpu.dimension_semantics<parallel>, #tpu.dimension_semantics<parallel>], iteration_bounds = array<i64: 1, 98>, scalar_prefetch = 0 : i64, scratch_operands = 0 : i64, tpu.core_type = #tpu.core_type<tc>, window_params = [{transform_indices = @transform_0, window_bounds = array<i64: 256, 256>}, {transform_indices = @transform_1, window_bounds = array<i64: 256, 128>}, {transform_indices = @transform_2, window_bounds = array<i64: 1, 128>}, {transform_indices = @transform_3, window_bounds = array<i64: 1, 128>}, {transform_indices = @transform_4, window_bounds = array<i64: 256, 128>}]} {
    %c0 = arith.constant 0 : index
    %c0_0 = arith.constant 0 : index
    %0 = vector.load %arg2[%c0, %c0_0] : memref<256x256xbf16, #tpu.memory_space<vmem>>, vector<256x256xbf16>
    %c0_1 = arith.constant 0 : index
    %c0_2 = arith.constant 0 : index
    %1 = vector.load %arg3[%c0_1, %c0_2] : memref<256x128xbf16, #tpu.memory_space<vmem>>, vector<256x128xbf16>
    %cst = arith.constant dense<0.000000e+00> : vector<256x128xf32>
    %2 = tpu.matmul %0, %1, %cst {dimension_numbers = #tpu.dot_dimension_numbers<[1], [0], [0], [1], [0, 0, 1, 1], [], []>} : vector<256x256xbf16>, vector<256x128xbf16>, vector<256x128xf32> -> vector<256x128xf32>
    %c0_3 = arith.constant 0 : index
    %c0_4 = arith.constant 0 : index
    %3 = vector.load %arg4[%c0_3, %c0_4] : memref<1x128xf32, #tpu.memory_space<vmem>>, vector<1x128xf32>
    %4 = vector.broadcast %3 : vector<1x128xf32> to vector<256x128xf32>
    %5 = arith.mulf %2, %4 : vector<256x128xf32>
    %c0_5 = arith.constant 0 : index
    %c0_6 = arith.constant 0 : index
    %6 = vector.load %arg5[%c0_5, %c0_6] : memref<1x128xf32, #tpu.memory_space<vmem>>, vector<1x128xf32>
    %7 = vector.broadcast %6 : vector<1x128xf32> to vector<256x128xf32>
    %8 = arith.addf %5, %7 : vector<256x128xf32>
    %cst_7 = arith.constant 0.000000e+00 : f32
    %9 = vector.broadcast %cst_7 : f32 to vector<256x128xf32>
    %10 = arith.maximumf %8, %9 : vector<256x128xf32>
    %11 = arith.truncf %10 : vector<256x128xf32> to vector<256x128xbf16>
    %c0_8 = arith.constant 0 : index
    %c0_9 = arith.constant 0 : index
    %12 = vector.load %arg6[%c0_8, %c0_9] : memref<256x128xbf16, #tpu.memory_space<vmem>>, vector<256x128xbf16>
    tpu.vector_store %arg6[%c0_8, %c0_9], %11 {strides = array<i32>} : memref<256x128xbf16, #tpu.memory_space<vmem>>, vector<256x128xbf16>,
    return
  }
  func.func @transform_0(%arg0: i32, %arg1: i32) -> (i32, i32) {
    %c0_i32 = arith.constant 0 : i32
    %c0_i32_0 = arith.constant 0 : i32
    return %arg1, %c0_i32 : i32, i32
  }
  func.func @transform_1(%arg0: i32, %arg1: i32) -> (i32, i32) {
    %c0_i32 = arith.constant 0 : i32
    %c0_i32_0 = arith.constant 0 : i32
    return %c0_i32, %arg0 : i32, i32
  }
  func.func @transform_2(%arg0: i32, %arg1: i32) -> (i32, i32) {
    %c0_i32 = arith.constant 0 : i32
    %c0_i32_0 = arith.constant 0 : i32
    return %c0_i32, %arg0 : i32, i32
  }
  func.func @transform_3(%arg0: i32, %arg1: i32) -> (i32, i32) {
    %c0_i32 = arith.constant 0 : i32
    %c0_i32_0 = arith.constant 0 : i32
    return %c0_i32, %arg0 : i32, i32
  }
  func.func @transform_4(%arg0: i32, %arg1: i32) -> (i32, i32) {
    %c0_i32 = arith.constant 0 : i32
    return %arg1, %arg0 : i32, i32
  }
}

</mosaic_0001>

<bundles_post_ra>
// kernel: tpu_custom_call.1
= control target key start
LH: loop header
LB: loop body
LE: loop exit
PB: predicated region body
PF: predicated region fallthrough
CT: control target
= control target key end

     0   :  { %s2143_s0 = inlined_call_operand.hbm [shape: bf16[25088,256], index: 0, kind: input, shape index: {}]   ;;  %s2144_s1 = inlined_call_operand.hbm [shape: bf16[256,128], index: 1, kind: input, shape index: {}]   ;;  %s2145_s2 = inlined_call_operand.hbm [shape: f32[1,128], index: 2, kind: input, shape index: {}]   ;;  %s2146_s3 = inlined_call_operand.hbm [shape: f32[1,128], index: 3, kind: input, shape index: {}]   ;;  %s2147_s4 = inlined_call_operand.hbm [shape: bf16[25088,128], index: 4, kind: output, shape index: {}]  }
   0x1   :  { %2148 = sst [smem:[#allocation15_spill]] %s2144_s1 }
   0x2   :  { %2149 = sst [smem:[#allocation16_spill]] %s2145_s2 }
   0x3   :  { %9 = vsyncpa [#allocation3], 0 }
   0x4   :  { %11 = vsyncpa [#allocation3 + $0x1], 0 }
   0x5   :  { %12 = vsyncpa [#allocation6], 0 }
   0x6   :  { %13 = vsyncpa [#allocation9], 0 }
   0x7   :  { %14 = vsyncpa [#allocation4], 0 }
   0x8   :  { %16 = vsyncpa [#allocation4 + $0x1], 0  ;;  %s1822_s15 = smov 0   ;;  %s1824_s16 = smov 0  }
   0x9   :  { %s1826_s17 = smov 0   ;;  %s1828_s18 = smov 0  }
   0xa   :  { %s1830_s19 = smov 0   ;;  %s1832_s20 = smov 0  }
   0xb LB: > { %s1099_s21 = sadd.s32 4294967295, %s1786_s20   ;;  %s1100_s22 = sadd.s32 4294967294, %s1786_s20   ;;  %s1786_s20 = sphi %s1832_s20, %s22_s20   ;;  %s1782_s19 = sphi %s1830_s19, %s2164_s19   ;;  %s1778_s18 = sphi %s1828_s18, %s2163_s18   ;;  %s1774_s17 = sphi %s1826_s17, %s2162_s17   ;;  %s1770_s16 = sphi %s1824_s16, %s2161_s16   ;;  %s1766_s15 = sphi %s1822_s15, %s2160_s15  }
   0xc   : > { %p54_p0 = scmp.ne.s32.totalorder %s1770_s16, %s1766_s15  ;;  %p1856_p1 = scmp.eq.s32.totalorder %s1099_s21, 0 }
   0xd   : > { %p1860_p2 = scmp.eq.s32.totalorder %s1099_s21, 97  ;;  %p164_p3 = scmp.eq.s32.totalorder %s1100_s22, 97 }
   0xe   : > { %p1866_p4 = por %p1856_p1, %p54_p0  ;;  %p1101_p5 = scmp.ge.s32.totalorder %s1786_s20, 1 }
   0xf   : > { %p1871_p6 = por %p164_p3, %p54_p0  ;;  %p171_p7 = scmp.lt.s32.totalorder %s1786_s20, 99 }
  0x10   : > { %s2154_s1 = sld [smem:[#allocation15_spill]]  ;;  %s1788_s5 = smov [#allocation5]  }
  0x11   : > { %p1879_p8 = pnand %p1101_p5, %p171_p7  ;;  %s186_s6 = sshll.u32 %s1788_s5, 4  ;;  %s187_s6 = int_to_ptr.vmem [resolvable:$true] %s186_s6 }
  0x12   : > { %s2157_s2 = sld [smem:[#allocation16_spill]]  ;;  %s1789_s11 = smov 64  }
  0x13   : > { %p1491_p9 = pneg %p1879_p8  ;;  %s1790_s12 = smov 4  }
  0x14   : > { %s1791_s13 = smov [#allocation7]   ;;  %s213_s27 = sshll.u32 %s2146_s3, 4  ;;  %s214_s27 = int_to_ptr.hbm [resolvable:$true] %s213_s27 }
  0x15   : > { %p1887_p10 = pnand %p1491_p9, %p1856_p1  ;;  %s202_s14 = sshll.u32 %s1791_s13, 4  ;;  %s203_s14 = int_to_ptr.vmem [resolvable:$true] %s202_s14 }
  0x16   : > { %s184_s29 = sshll.u32 %s2154_s1, 4  ;;  %s1792_s28 = smov [#allocation8]   ;;  %s185_s29 = int_to_ptr.hbm [resolvable:$true] %s184_s29 }
  0x17   : > { %1494 = dma.hbm_to_vmem [thread:$0]  (!%p1887_p10), %s185_s29, 2048, %s187_s6, [#allocation6], %s1789_s11, %s1789_s11, %s1790_s12  }
  0x18   : > { %s200_s10 = sshll.u32 %s2157_s2, 4  ;;  %s215_s5 = sshll.u32 %s1792_s28, 4  ;;  %s201_s10 = int_to_ptr.hbm [resolvable:$true] %s200_s10  ;;  %s216_s5 = int_to_ptr.vmem [resolvable:$true] %s215_s5 }
  0x19   : > { %1497 = dma.hbm_to_vmem [thread:$0]  (!%p1887_p10), %s201_s10, 16, %s203_s14, [#allocation6]  }
  0x1a   : > { %1500 = dma.hbm_to_vmem [thread:$0]  (!%p1887_p10), %s214_s27, 16, %s216_s5, [#allocation9]  }
  0x1b   : > { %s31_s29 = sadd.s32 1, %s1782_s19  ;;  %s41_s6 = sadd.s32 1, %s1774_s17 }
  0x1c   : > { %p32_p11 = scmp.ge.s32.totalorder %s31_s29, 98  ;;  %p48_p12 = scmp.ne.s32.totalorder %s1774_s17, %s1770_s16 }
  0x1d   : > { %p49_p13 = scmp.eq.s32.totalorder %s1786_s20, 0  ;;  %p1512_p5 = scmp.lt.s32.totalorder %s1786_s20, 98 }
  0x1e   : > { %s2166_s29 = smov (%p32_p11, %s31_s29), 0  ;;  %p1916_p3 = por %p1860_p2, %p48_p12 }
  0x1f   : > { %p1910_p0 = por %p49_p13, %p48_p12  ;;  %s38_s7 = ssub.s32 %s1782_s19, %s2166_s29 }
  0x20   : > { %p39_p7 = scmp.eq.s32.totalorder %s38_s7, 0  ;;  %s226_s10 = sand.u32 1, %s1774_s17  }
  0x21   : > { %s1106_s11 = sshll.u32 %s226_s10, 8  ;;  %s1314_s13 = sshll.u32 %s1782_s19, 8 }
  0x22   : > { %s1925_s12 = scalar_select %p39_p7, %s1774_s17, %s41_s6  }
  0x23   : > { %s236_s22 = scalar_lea.hbm %s2143_s0, %s1314_s13  ;;  %s230_s27 = scalar_lea.vmem [#allocation2], %s1106_s11 }
  0x24   : > { %s239_s28 = sshll.u32 %s230_s27, 4  ;;  %s237_s24 = sshll.u32 %s236_s22, 4  ;;  %s240_s28 = int_to_ptr.vmem [resolvable:$true] %s239_s28  ;;  %s238_s24 = int_to_ptr.hbm [resolvable:$true] %s237_s24 }
  0x25   : > { %p1502_p2 = pnand %p1512_p5, %p1910_p0  ;;  %s227_s5 = scalar_lea.sflag [#allocation3], %s226_s10 }
  0x26   : > { %s1793_s1 = smov 128   ;;  %s1794_s2 = smov 8  }
  0x27   : > { %1504 = dma.hbm_to_vmem [thread:$0]  (!%p1502_p2), %s238_s24, 4096, %s240_s28, %s227_s5, %s1793_s1, %s1793_s1, %s1794_s2  }
  0x28   : > { %251 = sbr.rel (%p1879_p8) target bundleno = 349 (0x15d), region = 36  ;;  %s1936_s6 = sand.u32 (!%p1879_p8), 1, %s1770_s16  }
  0x29   : > { %s1111_s7 = sshll.u32 (!%p1879_p8), %s1936_s6, 8  ;;  %s254_s11 = scalar_lea.sflag (!%p1879_p8), [#allocation3], %s1936_s6 }
  0x2a   : > { %s1940_s13 = scalar_lea.vmem (!%p1879_p8), [#allocation2], %s1111_s7 }
  0x2d   : > { %1749 = dma.done.wait (%p1866_p4), %s254_s11, 4096  }
  0x2e   : > { %1751 = vsyncadd (%p1866_p4), %s254_s11, 4294963200 }
  0x2f   : > { %1753 = dma.done.wait (%p1856_p1), [#allocation6], 2064  }
  0x30   : > { %1755 = vsyncadd (%p1856_p1), [#allocation6], 4294965232 }
  0x31   : > { %1757 = dma.done.wait (%p1856_p1), [#allocation9], 16  }
  0x32   : > { %1759 = vsyncadd (%p1856_p1), [#allocation9], 4294967280  ;;  %v1354_v0 = vld [vmem:[#allocation5 + $0x38] sm:$0xff]  ;;  %v1353_v2 = vld [vmem:[#allocation5 + $0x30] sm:$0xff]  ;;  %s1115_s1 = sshll.u32 %s1936_s6, 7  ;;  %s1363_s23 = sshll.u32 %s1778_s18, 7 }
  0x33   : > { %v1362_v1 = vld [vmem:[#allocation5 + $0x78] sm:$0xff]  ;;  %620 = vmatpush.bf16.msra.mxu0 %v1354_v0  ;;  %1459 = vmatpush.bf16.msra.mxu2 %v1354_v0  ;;  %v1361_v3 = vld [vmem:[#allocation5 + $0x70] sm:$0xff]  ;;  %v1352_v4 = vld [vmem:[#allocation5 + $0x28] sm:$0xff]  ;;  %s2030_s2 = scalar_lea.vmem [#allocation10], %s1115_s1  ;;  %s979_s8 = scalar_lea.hbm %s2147_s4, %s1363_s23 }
  0x34   : > { %709 = vmatpush.bf16.msra.mxu1 %v1362_v1  ;;  %1467 = vmatpush.bf16.msra.mxu3 %v1362_v1  ;;  %v1360_v5 = vld [vmem:[#allocation5 + $0x68] sm:$0xff]  ;;  %v1351_v6 = vld [vmem:[#allocation5 + $0x20] sm:$0xff]  ;;  %v1350_v8 = vld [vmem:[#allocation5 + $0x18] sm:$0xff]  ;;  %s980_s18 = sshll.u32 %s2030_s2, 4  ;;  %s982_s10 = sshll.u32 %s979_s8, 4  ;;  %s981_s18 = int_to_ptr.vmem [resolvable:$true] %s980_s18  ;;  %s983_s10 = int_to_ptr.hbm [resolvable:$true] %s982_s10 }
  0x35   : > { %v1359_v7 = vld [vmem:[#allocation5 + $0x60] sm:$0xff]  ;;  %v1358_v9 = vld [vmem:[#allocation5 + $0x58] sm:$0xff]  ;;  %v1349_v10 = vld [vmem:[#allocation5 + $0x10] sm:$0xff]  ;;  %s967_s14 = scalar_lea.sflag [#allocation4], %s1936_s6  ;;  %s1710_s21 = sshra.s32 %s983_s10, 4  ;;  %s1711_s21 = int_to_ptr.hbm [resolvable:$true] %s1710_s21 }
  0x36   : > { %v1357_v11 = vld [vmem:[#allocation5 + $0x50] sm:$0xff]  ;;  %v1348_v12 = vld [vmem:[#allocation5 + $0x8] sm:$0xff]  ;;  %v1347_v14 = vld [vmem:[#allocation5] sm:$0xff]  ;;  %s1712_s22 = scalar_lea.hbm %s1711_s21, 128  ;;  %s1716_s24 = scalar_lea.hbm %s2147_s4, 12544 }
  0x37   : > { %621 = vmatpush.bf16.msra.mxu0 %v1353_v2  ;;  %1460 = vmatpush.bf16.msra.mxu2 %v1353_v2  ;;  %v1356_v13 = vld [vmem:[#allocation5 + $0x48] sm:$0xff]  ;;  %v1355_v15 = vld [vmem:[#allocation5 + $0x40] sm:$0xff]  ;;  %v1126_v28 = vld [vmem:[%s1940_s13 + $0x10] sm:$0xf]  ;;  %p1713_p1 = scmp.ne.s32.totalorder %s1711_s21, %s1712_s22  ;;  %p1717_p9 = scmp.lt.s32.totalorder %s1711_s21, %s2147_s4 }
  0x38   : > { %710 = vmatpush.bf16.msra.mxu1 %v1361_v3  ;;  %1468 = vmatpush.bf16.msra.mxu3 %v1361_v3  ;;  %v1118_v16 = vld [vmem:[%s1940_s13] sm:$0xf]  ;;  %v1316_v17 = vld [vmem:[%s1940_s13 + $0x4] sm:$0xf0]  ;;  %v1315_v20 = vld [vmem:[%s1940_s13 + $0x4] sm:$0xf]  ;;  %p1718_p10 = scmp.lt.s32.totalorder %s1716_s24, %s1712_s22 }
  0x39   : > { %v1182_v18 = vld [vmem:[%s1940_s13 + $0x80] sm:$0xf]  ;;  %v1332_v19 = vld [vmem:[%s1940_s13 + $0x84] sm:$0xf0]  ;;  %v1120_v21 = vld [vmem:[%s1940_s13 + $0x8] sm:$0xf0]  ;;  %v1119_v24 = vor.u32 %v1316_v17, %v1118_v16  ;;  %p1714_p4 = pnand %p1713_p1, %p1916_p3 }
  0x3a   : > { %v1331_v22 = vld [vmem:[%s1940_s13 + $0x84] sm:$0xf]  ;;  %v1184_v23 = vld [vmem:[%s1940_s13 + $0x88] sm:$0xf0]  ;;  %v1183_v25 = vor.u32 %v1332_v19, %v1182_v18  ;;  %v1123_v26 = vor.u32 %v1315_v20, %v1120_v21  ;;  %v1318_v29 = vld [vmem:[%s1940_s13 + $0x14] sm:$0xf0]  ;;  %p1719_p11 = por %p1718_p10, %p1717_p9 }
  0x3b   : > { %622 = vmatpush.bf16.msra.mxu0 %v1352_v4  ;;  %1461 = vmatpush.bf16.msra.mxu2 %v1352_v4  ;;  %v1187_v27 = vor.u32 %v1331_v22, %v1184_v23  ;;  %v1190_v30 = vld [vmem:[%s1940_s13 + $0x90] sm:$0xf]  ;;  %v1334_v31 = vld [vmem:[%s1940_s13 + $0x94] sm:$0xf0]  ;;  %v1317_v32 = vld [vmem:[%s1940_s13 + $0x14] sm:$0xf]  ;;  %v1127_v36 = vor.u32 %v1318_v29, %v1126_v28  ;;  %p1715_p8 = pneg %p1714_p4 }
  0x3c   : > { %711 = vmatpush.bf16.msra.mxu1 %v1360_v5  ;;  %1469 = vmatpush.bf16.msra.mxu3 %v1360_v5  ;;  %v1128_v33 = vld [vmem:[%s1940_s13 + $0x18] sm:$0xf0]  ;;  %v1333_v34 = vld [vmem:[%s1940_s13 + $0x94] sm:$0xf]  ;;  %v1191_v37 = vor.u32 %v1334_v31, %v1190_v30  ;;  %v1134_v40 = vld [vmem:[%s1940_s13 + $0x20] sm:$0xf] }
  0x3d   : > { %v1192_v35 = vld [vmem:[%s1940_s13 + $0x98] sm:$0xf0]  ;;  %v1131_v38 = vor.u32 %v1317_v32, %v1128_v33  ;;  %v1320_v41 = vld [vmem:[%s1940_s13 + $0x24] sm:$0xf0]  ;;  %v1198_v42 = vld [vmem:[%s1940_s13 + $0xa0] sm:$0xf]  ;;  %p1720_p12 = pnand %p1719_p11, %p1715_p8 }
  0x3e   : > { %v1195_v39 = vor.u32 %v1333_v34, %v1192_v35  ;;  %v1336_v43 = vld [vmem:[%s1940_s13 + $0xa4] sm:$0xf0]  ;;  %v1319_v44 = vld [vmem:[%s1940_s13 + $0x24] sm:$0xf]  ;;  %v1136_v45 = vld [vmem:[%s1940_s13 + $0x28] sm:$0xf0]  ;;  %v1135_v48 = vor.u32 %v1320_v41, %v1134_v40 }
  0x3f   : > { %623 = vmatpush.bf16.msra.mxu0 %v1351_v6  ;;  %1462 = vmatpush.bf16.msra.mxu2 %v1351_v6  ;;  %v1335_v46 = vld [vmem:[%s1940_s13 + $0xa4] sm:$0xf]  ;;  %v1200_v47 = vld [vmem:[%s1940_s13 + $0xa8] sm:$0xf0]  ;;  %v1199_v49 = vor.u32 %v1336_v43, %v1198_v42  ;;  %v1139_v50 = vor.u32 %v1319_v44, %v1136_v45  ;;  %v1142_v52 = vld [vmem:[%s1940_s13 + $0x30] sm:$0xf] }
  0x40   : > { %712 = vmatpush.bf16.msra.mxu1 %v1359_v7  ;;  %1470 = vmatpush.bf16.msra.mxu3 %v1359_v7  ;;  %v1203_v51 = vor.u32 %v1335_v46, %v1200_v47  ;;  %v1322_v53 = vld [vmem:[%s1940_s13 + $0x34] sm:$0xf0]  ;;  %v1206_v54 = vld [vmem:[%s1940_s13 + $0xb0] sm:$0xf]  ;;  %v1321_v56 = vld [vmem:[%s1940_s13 + $0x34] sm:$0xf] }
  0x41   : > { %v1338_v55 = vld [vmem:[%s1940_s13 + $0xb4] sm:$0xf0]  ;;  %v1144_v57 = vld [vmem:[%s1940_s13 + $0x38] sm:$0xf0]  ;;  %v1337_v58 = vld [vmem:[%s1940_s13 + $0xb4] sm:$0xf]  ;;  %v1143_v60 = vor.u32 %v1322_v53, %v1142_v52 }
  0x42   : > { %v1208_v59 = vld [vmem:[%s1940_s13 + $0xb8] sm:$0xf0]  ;;  %v1207_v61 = vor.u32 %v1338_v55, %v1206_v54  ;;  %v1147_v62 = vor.u32 %v1321_v56, %v1144_v57  ;;  %v1150_v0 = vld [vmem:[%s1940_s13 + $0x40] sm:$0xf]  ;;  %v1324_v1 = vld [vmem:[%s1940_s13 + $0x44] sm:$0xf0] }
  0x43   : > { %624 = vmatpush.bf16.msra.mxu0 %v1350_v8  ;;  %1463 = vmatpush.bf16.msra.mxu2 %v1350_v8  ;;  %v1211_v63 = vor.u32 %v1337_v58, %v1208_v59  ;;  %v1214_v2 = vld [vmem:[%s1940_s13 + $0xc0] sm:$0xf]  ;;  %v1340_v3 = vld [vmem:[%s1940_s13 + $0xc4] sm:$0xf0]  ;;  %v1323_v4 = vld [vmem:[%s1940_s13 + $0x44] sm:$0xf]  ;;  %v1151_v8 = vor.u32 %v1324_v1, %v1150_v0 }
  0x44   : > { %713 = vmatpush.bf16.msra.mxu1 %v1358_v9  ;;  %1471 = vmatpush.bf16.msra.mxu3 %v1358_v9  ;;  %v1152_v5 = vld [vmem:[%s1940_s13 + $0x48] sm:$0xf0]  ;;  %v1339_v6 = vld [vmem:[%s1940_s13 + $0xc4] sm:$0xf]  ;;  %v1215_v9 = vor.u32 %v1340_v3, %v1214_v2  ;;  %v1325_v16 = vld [vmem:[%s1940_s13 + $0x54] sm:$0xf] }
  0x45   : > { %v1216_v7 = vld [vmem:[%s1940_s13 + $0xc8] sm:$0xf0]  ;;  %v1160_v17 = vld [vmem:[%s1940_s13 + $0x58] sm:$0xf0]  ;;  %v1341_v18 = vld [vmem:[%s1940_s13 + $0xd4] sm:$0xf] }
  0x46   : > { %v1224_v19 = vld [vmem:[%s1940_s13 + $0xd8] sm:$0xf0]  ;;  %v1163_v22 = vor.u32 %v1325_v16, %v1160_v17  ;;  %v1327_v28 = vld [vmem:[%s1940_s13 + $0x64] sm:$0xf]  ;;  %v1168_v29 = vld [vmem:[%s1940_s13 + $0x68] sm:$0xf0] }
  0x47   : > { %625 = vmatpush.bf16.msra.mxu0 %v1349_v10  ;;  %1464 = vmatpush.bf16.msra.mxu2 %v1349_v10  ;;  %v1155_v10 = vor.u32 %v1323_v4, %v1152_v5  ;;  %v1227_v23 = vor.u32 %v1341_v18, %v1224_v19  ;;  %v1343_v30 = vld [vmem:[%s1940_s13 + $0xe4] sm:$0xf]  ;;  %v1232_v31 = vld [vmem:[%s1940_s13 + $0xe8] sm:$0xf0]  ;;  %v1171_v34 = vor.u32 %v1327_v28, %v1168_v29  ;;  %v1329_v40 = vld [vmem:[%s1940_s13 + $0x74] sm:$0xf] }
  0x48   : > { %714 = vmatpush.bf16.msra.mxu1 %v1357_v11  ;;  %1472 = vmatpush.bf16.msra.mxu3 %v1357_v11  ;;  %v1219_v11 = vor.u32 %v1339_v6, %v1216_v7  ;;  %v1235_v35 = vor.u32 %v1343_v30, %v1232_v31  ;;  %v1176_v41 = vld [vmem:[%s1940_s13 + $0x78] sm:$0xf0]  ;;  %v1345_v42 = vld [vmem:[%s1940_s13 + $0xf4] sm:$0xf]  ;;  %v2021_v55 = vld [vmem:[#allocation8] ss:$0 sm:$0xff] }
  0x49   : > { %v1240_v43 = vld [vmem:[%s1940_s13 + $0xf8] sm:$0xf0]  ;;  %v1179_v46 = vor.u32 %v1329_v40, %v1176_v41 }
  0x4a   : > { %v1243_v47 = vor.u32 %v1345_v42, %v1240_v43 }
  0x4b   : > { %626 = vmatpush.bf16.msra.mxu0 %v1348_v12  ;;  %1465 = vmatpush.bf16.msra.mxu2 %v1348_v12  ;;  %v1158_v12 = vld [vmem:[%s1940_s13 + $0x50] sm:$0xf] }
  0x4c   : > { %715 = vmatpush.bf16.msra.mxu1 %v1356_v13  ;;  %1473 = vmatpush.bf16.msra.mxu3 %v1356_v13  ;;  %v1326_v13 = vld [vmem:[%s1940_s13 + $0x54] sm:$0xf0] }
  0x4d   : > { %v1159_v20 = vor.u32 %v1326_v13, %v1158_v12 }
  0x4f   : > { %627 = vmatpush.bf16.msra.mxu0 %v1347_v14  ;;  %1466 = vmatpush.bf16.msra.mxu2 %v1347_v14  ;;  %v1222_v14 = vld [vmem:[%s1940_s13 + $0xd0] sm:$0xf] }
  0x50   : > { %716 = vmatpush.bf16.msra.mxu1 %v1355_v15  ;;  %1474 = vmatpush.bf16.msra.mxu3 %v1355_v15  ;;  %v1342_v15 = vld [vmem:[%s1940_s13 + $0xd4] sm:$0xf0] }
  0x51   : > { %v1223_v21 = vor.u32 %v1342_v15, %v1222_v14 }
  0x52   : > { %628 = vmatmul.bf16.vlgmr.msra.gmra.mxu0 %v1119_v24  ;;  %668 = vmatmul.bf16.vlgmr.msra.gmra.mxu2 %v1183_v25  ;;  %v1166_v24 = vld [vmem:[%s1940_s13 + $0x60] sm:$0xf]  ;;  %v1328_v25 = vld [vmem:[%s1940_s13 + $0x64] sm:$0xf0] }
  0x53   : > { %717 = vmatmul.bf16.vlgmr.msra.gmra.mxu1 %v1123_v26  ;;  %757 = vmatmul.bf16.vlgmr.msra.gmra.mxu3 %v1187_v27  ;;  %v1230_v26 = vld [vmem:[%s1940_s13 + $0xe0] sm:$0xf]  ;;  %v1344_v27 = vld [vmem:[%s1940_s13 + $0xe4] sm:$0xf0]  ;;  %v1167_v32 = vor.u32 %v1328_v25, %v1166_v24 }
  0x54   : > { %v1231_v33 = vor.u32 %v1344_v27, %v1230_v26 }
  0x62   : > { %633 = vmatmul.bf16.gmra.mxu0 %v1127_v36  ;;  %673 = vmatmul.bf16.gmra.mxu2 %v1191_v37  ;;  %v1174_v36 = vld [vmem:[%s1940_s13 + $0x70] sm:$0xf]  ;;  %v1330_v37 = vld [vmem:[%s1940_s13 + $0x74] sm:$0xf0] }
  0x63   : > { %722 = vmatmul.bf16.gmra.mxu1 %v1131_v38  ;;  %762 = vmatmul.bf16.gmra.mxu3 %v1195_v39  ;;  %v1238_v38 = vld [vmem:[%s1940_s13 + $0xf0] sm:$0xf]  ;;  %v1346_v39 = vld [vmem:[%s1940_s13 + $0xf4] sm:$0xf0]  ;;  %v1175_v44 = vor.u32 %v1330_v37, %v1174_v36 }
  0x64   : > { %v1239_v45 = vor.u32 %v1346_v39, %v1238_v38 }
  0x72   : > { %638 = vmatmul.bf16.gmra.mxu0 %v1135_v48  ;;  %678 = vmatmul.bf16.gmra.mxu2 %v1199_v49 }
  0x73   : > { %727 = vmatmul.bf16.gmra.mxu1 %v1139_v50  ;;  %767 = vmatmul.bf16.gmra.mxu3 %v1203_v51  ;;  %v2018_v51 = vld [vmem:[#allocation7] ss:$0 sm:$0xff] }
  0x82   : > { %643 = vmatmul.bf16.gmra.mxu0 %v1143_v60  ;;  %683 = vmatmul.bf16.gmra.mxu2 %v1207_v61 }
  0x83   : > { %732 = vmatmul.bf16.gmra.mxu1 %v1147_v62  ;;  %772 = vmatmul.bf16.gmra.mxu3 %v1211_v63 }
  0x92   : > { %648 = vmatmul.bf16.gmra.mxu0 %v1151_v8  ;;  %688 = vmatmul.bf16.gmra.mxu2 %v1215_v9 }
  0x93   : > { %737 = vmatmul.bf16.gmra.mxu1 %v1155_v10  ;;  %777 = vmatmul.bf16.gmra.mxu3 %v1219_v11 }
  0xa2   : > { %653 = vmatmul.bf16.gmra.mxu0 %v1159_v20  ;;  %693 = vmatmul.bf16.gmra.mxu2 %v1223_v21 }
  0xa3   : > { %742 = vmatmul.bf16.gmra.mxu1 %v1163_v22  ;;  %782 = vmatmul.bf16.gmra.mxu3 %v1227_v23 }
  0xb2   : > { %658 = vmatmul.bf16.gmra.mxu0 %v1167_v32  ;;  %698 = vmatmul.bf16.gmra.mxu2 %v1231_v33 }
  0xb3   : > { %747 = vmatmul.bf16.gmra.mxu1 %v1171_v34  ;;  %787 = vmatmul.bf16.gmra.mxu3 %v1235_v35 }
  0xc2   : > { %663 = vmatmul.bf16.gmra.mxu0 %v1175_v44  ;;  %703 = vmatmul.bf16.gmra.mxu2 %v1239_v45 }
  0xc3   : > { %752 = vmatmul.bf16.gmra.mxu1 %v1179_v46  ;;  %792 = vmatmul.bf16.gmra.mxu3 %v1243_v47 }
  0xcf   : > { %v629_v48 = vpop.f32.mrf.mxu0 }
  0xd0   : > { %v718_v49 = vpop.f32.mrf.mxu1 }
  0xd1   : > { %v719_v50 = vadd.f32 %v718_v49, %v629_v48 }
  0xd3   : > { %v802_v54 = vmul.f32 %v2018_v51, %v719_v50 }
  0xd5   : > { %v669_v52 = vpop.f32.mrf.mxu2  ;;  %v838_v60 = vadd.f32 %v2021_v55, %v802_v54 }
  0xd6   : > { %v758_v53 = vpop.f32.mrf.mxu3 }
  0xd7   : > { %v631_v56 = vpop.f32.mrf.mxu0  ;;  %v759_v58 = vadd.f32 %v758_v53, %v669_v52  ;;  %v870_v2 = vmax.f32 %v838_v60, 0.0 }
  0xd8   : > { %v720_v57 = vpop.f32.mrf.mxu1 }
  0xd9   : > { %v721_v59 = vadd.f32 %v720_v57, %v631_v56  ;;  %v818_v62 = vmul.f32 %v2018_v51, %v759_v58 }
  0xdb   : > { %v803_v61 = vmul.f32 %v2018_v51, %v721_v59  ;;  %v854_v7 = vadd.f32 %v2021_v55, %v818_v62 }
  0xdd   : > { %v839_v63 = vadd.f32 %v2021_v55, %v803_v61  ;;  %v671_v0 = vpop.f32.mrf.mxu2  ;;  %v886_v12 = vmax.f32 %v854_v7, 0.0 }
  0xde   : > { %v760_v1 = vpop.f32.mrf.mxu3 }
  0xdf   : > { %v871_v3 = vmax.f32 %v839_v63, 0.0  ;;  %v761_v4 = vadd.f32 %v760_v1, %v671_v0  ;;  %v634_v5 = vpop.f32.mrf.mxu0 }
  0xe0   : > { %v723_v6 = vpop.f32.mrf.mxu1 }
  0xe1   : > { %v1367_v8 = vpack.c.bf16 %v871_v3, %v870_v2  ;;  %v819_v9 = vmul.f32 %v2018_v51, %v761_v4  ;;  %v724_v11 = vadd.f32 %v723_v6, %v634_v5 }
  0xe3   : > { %1368 = vst [vmem:[%s2030_s2] sm:$0xff] %v1367_v8   ;;  %v855_v10 = vadd.f32 %v2021_v55, %v819_v9  ;;  %v804_v17 = vmul.f32 %v2018_v51, %v724_v11 }
  0xe5   : > { %v887_v13 = vmax.f32 %v855_v10, 0.0  ;;  %v674_v14 = vpop.f32.mrf.mxu2  ;;  %v840_v22 = vadd.f32 %v2021_v55, %v804_v17 }
  0xe6   : > { %v763_v15 = vpop.f32.mrf.mxu3 }
  0xe7   : > { %v1407_v16 = vpack.c.bf16 %v887_v13, %v886_v12  ;;  %v636_v18 = vpop.f32.mrf.mxu0  ;;  %v764_v20 = vadd.f32 %v763_v15, %v674_v14  ;;  %v872_v28 = vmax.f32 %v840_v22, 0.0 }
  0xe8   : > { %v725_v19 = vpop.f32.mrf.mxu1 }
  0xe9   : > { %1451 = vst [vmem:[%s2030_s2 + $0x40] sm:$0xff] %v1407_v16   ;;  %v726_v21 = vadd.f32 %v725_v19, %v636_v18  ;;  %v820_v24 = vmul.f32 %v2018_v51, %v764_v20 }
  0xeb   : > { %v805_v23 = vmul.f32 %v2018_v51, %v726_v21  ;;  %v856_v33 = vadd.f32 %v2021_v55, %v820_v24 }
  0xed   : > { %v841_v25 = vadd.f32 %v2021_v55, %v805_v23  ;;  %v676_v26 = vpop.f32.mrf.mxu2  ;;  %v888_v38 = vmax.f32 %v856_v33, 0.0 }
  0xee   : > { %v765_v27 = vpop.f32.mrf.mxu3 }
  0xef   : > { %v873_v29 = vmax.f32 %v841_v25, 0.0  ;;  %v766_v30 = vadd.f32 %v765_v27, %v676_v26  ;;  %v639_v31 = vpop.f32.mrf.mxu0 }
  0xf0   : > { %v728_v32 = vpop.f32.mrf.mxu1 }
  0xf1   : > { %v1372_v34 = vpack.c.bf16 %v873_v29, %v872_v28  ;;  %v821_v35 = vmul.f32 %v2018_v51, %v766_v30  ;;  %v729_v37 = vadd.f32 %v728_v32, %v639_v31 }
  0xf3   : > { %1444 = vst [vmem:[%s2030_s2 + $0x8] sm:$0xff] %v1372_v34   ;;  %v857_v36 = vadd.f32 %v2021_v55, %v821_v35  ;;  %v806_v43 = vmul.f32 %v2018_v51, %v729_v37 }
  0xf5   : > { %v889_v39 = vmax.f32 %v857_v36, 0.0  ;;  %v679_v40 = vpop.f32.mrf.mxu2  ;;  %v842_v48 = vadd.f32 %v2021_v55, %v806_v43 }
  0xf6   : > { %v768_v41 = vpop.f32.mrf.mxu3 }
  0xf7   : > { %v1412_v42 = vpack.c.bf16 %v889_v39, %v888_v38  ;;  %v641_v44 = vpop.f32.mrf.mxu0  ;;  %v769_v46 = vadd.f32 %v768_v41, %v679_v40  ;;  %v874_v56 = vmax.f32 %v842_v48, 0.0 }
  0xf8   : > { %v730_v45 = vpop.f32.mrf.mxu1 }
  0xf9   : > { %1452 = vst [vmem:[%s2030_s2 + $0x48] sm:$0xff] %v1412_v42   ;;  %v731_v47 = vadd.f32 %v730_v45, %v641_v44  ;;  %v822_v50 = vmul.f32 %v2018_v51, %v769_v46 }
  0xfb   : > { %v807_v49 = vmul.f32 %v2018_v51, %v731_v47  ;;  %v858_v61 = vadd.f32 %v2021_v55, %v822_v50 }
  0xfd   : > { %v843_v52 = vadd.f32 %v2021_v55, %v807_v49  ;;  %v681_v53 = vpop.f32.mrf.mxu2  ;;  %v890_v2 = vmax.f32 %v858_v61, 0.0 }
  0xfe   : > { %v770_v54 = vpop.f32.mrf.mxu3 }
  0xff   : > { %v875_v57 = vmax.f32 %v843_v52, 0.0  ;;  %v771_v58 = vadd.f32 %v770_v54, %v681_v53  ;;  %v644_v59 = vpop.f32.mrf.mxu0 }
 0x100   : > { %v733_v60 = vpop.f32.mrf.mxu1 }
 0x101   : > { %v1377_v62 = vpack.c.bf16 %v875_v57, %v874_v56  ;;  %v823_v63 = vmul.f32 %v2018_v51, %v771_v58  ;;  %v734_v1 = vadd.f32 %v733_v60, %v644_v59 }
 0x103   : > { %1445 = vst [vmem:[%s2030_s2 + $0x10] sm:$0xff] %v1377_v62   ;;  %v859_v0 = vadd.f32 %v2021_v55, %v823_v63  ;;  %v808_v7 = vmul.f32 %v2018_v51, %v734_v1 }
 0x105   : > { %v891_v3 = vmax.f32 %v859_v0, 0.0  ;;  %v684_v4 = vpop.f32.mrf.mxu2  ;;  %v844_v12 = vadd.f32 %v2021_v55, %v808_v7 }
 0x106   : > { %v773_v5 = vpop.f32.mrf.mxu3 }
 0x107   : > { %v1417_v6 = vpack.c.bf16 %v891_v3, %v890_v2  ;;  %v646_v8 = vpop.f32.mrf.mxu0  ;;  %v774_v10 = vadd.f32 %v773_v5, %v684_v4  ;;  %v876_v18 = vmax.f32 %v844_v12, 0.0 }
 0x108   : > { %v735_v9 = vpop.f32.mrf.mxu1 }
 0x109   : > { %1453 = vst [vmem:[%s2030_s2 + $0x50] sm:$0xff] %v1417_v6   ;;  %v736_v11 = vadd.f32 %v735_v9, %v646_v8  ;;  %v824_v14 = vmul.f32 %v2018_v51, %v774_v10 }
 0x10b   : > { %v809_v13 = vmul.f32 %v2018_v51, %v736_v11  ;;  %v860_v23 = vadd.f32 %v2021_v55, %v824_v14 }
 0x10d   : > { %v845_v15 = vadd.f32 %v2021_v55, %v809_v13  ;;  %v686_v16 = vpop.f32.mrf.mxu2  ;;  %v892_v28 = vmax.f32 %v860_v23, 0.0 }
 0x10e   : > { %v775_v17 = vpop.f32.mrf.mxu3 }
 0x10f   : > { %v877_v19 = vmax.f32 %v845_v15, 0.0  ;;  %v776_v20 = vadd.f32 %v775_v17, %v686_v16  ;;  %v649_v21 = vpop.f32.mrf.mxu0 }
 0x110   : > { %v738_v22 = vpop.f32.mrf.mxu1 }
 0x111   : > { %v1382_v24 = vpack.c.bf16 %v877_v19, %v876_v18  ;;  %v825_v25 = vmul.f32 %v2018_v51, %v776_v20  ;;  %v739_v27 = vadd.f32 %v738_v22, %v649_v21 }
 0x113   : > { %1446 = vst [vmem:[%s2030_s2 + $0x18] sm:$0xff] %v1382_v24   ;;  %v861_v26 = vadd.f32 %v2021_v55, %v825_v25  ;;  %v810_v33 = vmul.f32 %v2018_v51, %v739_v27 }
 0x115   : > { %v893_v29 = vmax.f32 %v861_v26, 0.0  ;;  %v689_v30 = vpop.f32.mrf.mxu2  ;;  %v846_v38 = vadd.f32 %v2021_v55, %v810_v33 }
 0x116   : > { %v778_v31 = vpop.f32.mrf.mxu3 }
 0x117   : > { %v1422_v32 = vpack.c.bf16 %v893_v29, %v892_v28  ;;  %v651_v34 = vpop.f32.mrf.mxu0  ;;  %v779_v36 = vadd.f32 %v778_v31, %v689_v30  ;;  %v878_v44 = vmax.f32 %v846_v38, 0.0 }
 0x118   : > { %v740_v35 = vpop.f32.mrf.mxu1 }
 0x119   : > { %1454 = vst [vmem:[%s2030_s2 + $0x58] sm:$0xff] %v1422_v32   ;;  %v741_v37 = vadd.f32 %v740_v35, %v651_v34  ;;  %v826_v40 = vmul.f32 %v2018_v51, %v779_v36 }
 0x11b   : > { %v811_v39 = vmul.f32 %v2018_v51, %v741_v37  ;;  %v862_v49 = vadd.f32 %v2021_v55, %v826_v40 }
 0x11d   : > { %v847_v41 = vadd.f32 %v2021_v55, %v811_v39  ;;  %v691_v42 = vpop.f32.mrf.mxu2  ;;  %v894_v56 = vmax.f32 %v862_v49, 0.0 }
 0x11e   : > { %v780_v43 = vpop.f32.mrf.mxu3 }
 0x11f   : > { %v879_v45 = vmax.f32 %v847_v41, 0.0  ;;  %v781_v46 = vadd.f32 %v780_v43, %v691_v42  ;;  %v654_v47 = vpop.f32.mrf.mxu0 }
 0x120   : > { %v743_v48 = vpop.f32.mrf.mxu1 }
 0x121   : > { %v1387_v50 = vpack.c.bf16 %v879_v45, %v878_v44  ;;  %v827_v52 = vmul.f32 %v2018_v51, %v781_v46  ;;  %v744_v54 = vadd.f32 %v743_v48, %v654_v47 }
 0x123   : > { %1447 = vst [vmem:[%s2030_s2 + $0x20] sm:$0xff] %v1387_v50   ;;  %v863_v53 = vadd.f32 %v2021_v55, %v827_v52  ;;  %v812_v61 = vmul.f32 %v2018_v51, %v744_v54 }
 0x125   : > { %v895_v57 = vmax.f32 %v863_v53, 0.0  ;;  %v694_v58 = vpop.f32.mrf.mxu2  ;;  %v848_v2 = vadd.f32 %v2021_v55, %v812_v61 }
 0x126   : > { %v783_v59 = vpop.f32.mrf.mxu3 }
 0x127   : > { %v1427_v60 = vpack.c.bf16 %v895_v57, %v894_v56  ;;  %v656_v62 = vpop.f32.mrf.mxu0  ;;  %v784_v0 = vadd.f32 %v783_v59, %v694_v58  ;;  %v880_v8 = vmax.f32 %v848_v2, 0.0 }
 0x128   : > { %v745_v63 = vpop.f32.mrf.mxu1 }
 0x129   : > { %1455 = vst [vmem:[%s2030_s2 + $0x60] sm:$0xff] %v1427_v60   ;;  %v746_v1 = vadd.f32 %v745_v63, %v656_v62  ;;  %v828_v4 = vmul.f32 %v2018_v51, %v784_v0 }
 0x12b   : > { %v813_v3 = vmul.f32 %v2018_v51, %v746_v1  ;;  %v864_v13 = vadd.f32 %v2021_v55, %v828_v4 }
 0x12d   : > { %v849_v5 = vadd.f32 %v2021_v55, %v813_v3  ;;  %v696_v6 = vpop.f32.mrf.mxu2  ;;  %v896_v18 = vmax.f32 %v864_v13, 0.0 }
 0x12e   : > { %v785_v7 = vpop.f32.mrf.mxu3 }
 0x12f   : > { %v881_v9 = vmax.f32 %v849_v5, 0.0  ;;  %v786_v10 = vadd.f32 %v785_v7, %v696_v6  ;;  %v659_v11 = vpop.f32.mrf.mxu0 }
 0x130   : > { %v748_v12 = vpop.f32.mrf.mxu1 }
 0x131   : > { %v1392_v14 = vpack.c.bf16 %v881_v9, %v880_v8  ;;  %v829_v15 = vmul.f32 %v2018_v51, %v786_v10  ;;  %v749_v17 = vadd.f32 %v748_v12, %v659_v11 }
 0x133   : > { %1448 = vst [vmem:[%s2030_s2 + $0x28] sm:$0xff] %v1392_v14   ;;  %v865_v16 = vadd.f32 %v2021_v55, %v829_v15  ;;  %v814_v23 = vmul.f32 %v2018_v51, %v749_v17 }
 0x135   : > { %v897_v19 = vmax.f32 %v865_v16, 0.0  ;;  %v699_v20 = vpop.f32.mrf.mxu2  ;;  %v850_v28 = vadd.f32 %v2021_v55, %v814_v23 }
 0x136   : > { %v788_v21 = vpop.f32.mrf.mxu3 }
 0x137   : > { %v1432_v22 = vpack.c.bf16 %v897_v19, %v896_v18  ;;  %v661_v24 = vpop.f32.mrf.mxu0  ;;  %v789_v26 = vadd.f32 %v788_v21, %v699_v20  ;;  %v882_v34 = vmax.f32 %v850_v28, 0.0 }
 0x138   : > { %v750_v25 = vpop.f32.mrf.mxu1 }
 0x139   : > { %1456 = vst [vmem:[%s2030_s2 + $0x68] sm:$0xff] %v1432_v22   ;;  %v751_v27 = vadd.f32 %v750_v25, %v661_v24  ;;  %v830_v30 = vmul.f32 %v2018_v51, %v789_v26 }
 0x13b   : > { %v815_v29 = vmul.f32 %v2018_v51, %v751_v27  ;;  %v866_v39 = vadd.f32 %v2021_v55, %v830_v30 }
 0x13d   : > { %v851_v31 = vadd.f32 %v2021_v55, %v815_v29  ;;  %v701_v32 = vpop.f32.mrf.mxu2  ;;  %v898_v44 = vmax.f32 %v866_v39, 0.0 }
 0x13e   : > { %v790_v33 = vpop.f32.mrf.mxu3 }
 0x13f   : > { %v883_v35 = vmax.f32 %v851_v31, 0.0  ;;  %v791_v36 = vadd.f32 %v790_v33, %v701_v32  ;;  %v664_v37 = vpop.f32.mrf.mxu0 }
 0x140   : > { %v753_v38 = vpop.f32.mrf.mxu1 }
 0x141   : > { %v1397_v40 = vpack.c.bf16 %v883_v35, %v882_v34  ;;  %v831_v41 = vmul.f32 %v2018_v51, %v791_v36  ;;  %v754_v43 = vadd.f32 %v753_v38, %v664_v37 }
 0x143   : > { %1449 = vst [vmem:[%s2030_s2 + $0x30] sm:$0xff] %v1397_v40   ;;  %v867_v42 = vadd.f32 %v2021_v55, %v831_v41  ;;  %v816_v49 = vmul.f32 %v2018_v51, %v754_v43 }
 0x145   : > { %v899_v45 = vmax.f32 %v867_v42, 0.0  ;;  %v704_v46 = vpop.f32.mrf.mxu2  ;;  %v852_v56 = vadd.f32 %v2021_v55, %v816_v49 }
 0x146   : > { %v793_v47 = vpop.f32.mrf.mxu3 }
 0x147   : > { %v1437_v48 = vpack.c.bf16 %v899_v45, %v898_v44  ;;  %v666_v50 = vpop.f32.mrf.mxu0  ;;  %v794_v53 = vadd.f32 %v793_v47, %v704_v46  ;;  %v884_v62 = vmax.f32 %v852_v56, 0.0 }
 0x148   : > { %v755_v52 = vpop.f32.mrf.mxu1 }
 0x149   : > { %1457 = vst [vmem:[%s2030_s2 + $0x70] sm:$0xff] %v1437_v48   ;;  %v756_v54 = vadd.f32 %v755_v52, %v666_v50  ;;  %v832_v58 = vmul.f32 %v2018_v51, %v794_v53 }
 0x14b   : > { %v817_v57 = vmul.f32 %v2018_v51, %v756_v54  ;;  %v868_v1 = vadd.f32 %v2021_v55, %v832_v58 }
 0x14d   : > { %v853_v59 = vadd.f32 %v2021_v55, %v817_v57  ;;  %v706_v60 = vpop.f32.mrf.mxu2  ;;  %v900_v5 = vmax.f32 %v868_v1, 0.0 }
 0x14e   : > { %v795_v61 = vpop.f32.mrf.mxu3 }
 0x14f   : > { %v885_v63 = vmax.f32 %v853_v59, 0.0  ;;  %v796_v0 = vadd.f32 %v795_v61, %v706_v60 }
 0x151   : > { %v1402_v2 = vpack.c.bf16 %v885_v63, %v884_v62  ;;  %v833_v3 = vmul.f32 %v2018_v51, %v796_v0 }
 0x153   : > { %1450 = vst [vmem:[%s2030_s2 + $0x38] sm:$0xff] %v1402_v2   ;;  %v869_v4 = vadd.f32 %v2021_v55, %v833_v3 }
 0x155   : > { %v901_v6 = vmax.f32 %v869_v4, 0.0 }
 0x157   : > { %v1442_v7 = vpack.c.bf16 %v901_v6, %v900_v5 }
 0x159   : > { %1458 = vst [vmem:[%s2030_s2 + $0x78] sm:$0xff] %v1442_v7  }
 0x15a   : > { %1723 = shalt.err (!%p1720_p12)
}
 0x15b   : > { %s1795_s6 = smov 64   ;;  %s1796_s11 = smov 4  }
 0x15c   : > { %1489 = dma.vmem_to_hbm [thread:$0]  (%p1916_p3), %s981_s18, 2048, %s983_s10, %s967_s14, %s1795_s6, %s1795_s6, %s1796_s11  }
 0x15d PF: > { %p1516_p13 = scmp.ge.s32.totalorder %s1786_s20, 2  ;;  %s997_s13 = sand.u32 1, %s1766_s15  }
 0x15e   : > { %s998_s1 = scalar_lea.sflag [#allocation4], %s997_s13 }
 0x15f   : > { %p1506_p0 = pnand %p1516_p13, %p1871_p6 }
 0x161   : > { %p1507_p5 = pneg %p1506_p0 }
 0x163   : > { %1761 = dma.done.wait (%p1507_p5), %s998_s1, 2048  }
 0x164   : > { %1763 = vsyncadd (%p1507_p5), %s998_s1, 4294965248  ;;  %s22_s20 = sadd.s32 1, %s1786_s20   ;;  %s2160_s15 = smov %s1770_s16 }
 0x165   : > { %p19_p7 = scmp.ge.s32.totalorder %s22_s20, 100   ;;  %s2161_s16 = smov %s1774_s17 }
 0x166   : > { %s2162_s17 = smov %s1925_s12  ;;  %s2163_s18 = smov %s1782_s19 }
 0x167   : > { %s2164_s19 = smov %s2166_s29  ;;  %21 = sbr.rel (!%p19_p7) target bundleno = 11 (0xb), region = 96 }
 0x16c   :  { %1004 = vsyncpa [#allocation3], 1 }
 0x16d   :  { %1006 = vsyncpa [#allocation3 + $0x1], 1 }
 0x16e   :  { %1007 = vsyncpa [#allocation6], 1 }
 0x16f   :  { %1008 = vsyncpa [#allocation9], 1 }
 0x170   :  { %1009 = vsyncpa [#allocation4], 1 }
 0x171   :  { %1011 = vsyncpa [#allocation4 + $0x1], 1 }

</bundles_post_ra>
